<compile_context>
chip_gen: v7x
topology: tpu7x:2x2x1
jax: 0.10.0
libtpu: 0.0.40
codegen_flags: <defaults>
</compile_context>

<pallas_src>
import math
import numpy as np
import jax
import jax.numpy as jnp
from jax.experimental import pallas as pl
from jax.experimental.pallas import tpu as pltpu

LANE = 128
T_TILE_CAP = 4 * LANE          # cap output tiles at 512 lanes (still a multiple of 128)


def _largest_divisor_leq(n, cap):
    for dd in range(min(n, cap), 0, -1):
        if n % dd == 0:
            return dd
    return 1


def _make_kernel(K, C_pad, t_tile, V, use_halo, lin_blk):
    def kernel(*refs):
        if use_halo:
            xlo_ref, xhi_ref, d_ref, w_ref, b_ref, o_ref, xs_ref, z_ref = refs
            # fuse current + halo block into one 256-deep LHS slab
            xs_ref[:, :lin_blk] = xlo_ref[0].astype(jnp.float32)
            xs_ref[:, lin_blk:] = xhi_ref[0].astype(jnp.float32)
            xs = xs_ref[...]                                   # (C_pad, 2*lin_blk)
        else:
            xlo_ref, d_ref, w_ref, b_ref, o_ref, z_ref = refs
            xs = xlo_ref[0].astype(jnp.float32)                # (C_pad, W_in)

        # tile-start phase w.r.t. stride selects the static dilation matrix variant
        v = (pl.program_id(0) % V) if V > 1 else 0
        # ONE dilation matmul: zero-stuffed (stride-dilated) input window at output resolution.
        u = jnp.dot(xs, d_ref[v], preferred_element_type=jnp.float32)   # (C_pad, t_tile+K-1)

        # K tap-shifted copies: static lane slices of u -> folded-contraction slab in VMEM.
        for k in range(K):
            z_ref[pl.ds(k * C_pad, C_pad), :] = u[:, K - 1 - k: K - 1 - k + t_tile]

        # single channel-mixing matmul over the folded (K*C_pad) contraction + bias.
        y = jnp.dot(w_ref[...], z_ref[...], preferred_element_type=jnp.float32)  # (C_out, t_tile)
        o_ref[...] = (y + b_ref[...])[None].astype(o_ref.dtype)

    return kernel


def non_causal_conv_transpose1d(x, weight, bias, *, stride, padding=-1, output_padding=-1):
    """x: (B, C_in, T); weight: (C_in, C_out, K); bias: (C_out,).  groups=1, bias=True.
    Matches nn.ConvTranspose1d(stride, padding, output_padding) with NonCausalConvTranspose1d's
    default padding/output_padding rules.  Returns (B, C_out, T_out)."""
    if padding < 0:
        padding = (stride + 1) // 2
    if output_padding < 0:
        output_padding = 1 if stride % 2 else 0

    B, C_in, T = x.shape
    C_in_w, C_out, K = weight.shape
    assert C_in_w == C_in, "only groups=1 is supported"  # TODO(synk): grouped deconv
    T_out = (T - 1) * stride - 2 * padding + K + output_padding
    assert T_out > 0

    C_pad = ((C_in + 7) // 8) * 8

    # ---- output tiling: lane-dense tiles, capped independently of stride -----------------
    d = _largest_divisor_leq(stride, T_TILE_CAP // LANE)     # t_tile = 128*d <= 512
    if T_out > LANE * d:
        multi = True
        t_tile = LANE * d
        V = stride // d                  # number of distinct tile-start phases (D variants)
        lin_blk = LANE
        num_tiles = pl.cdiv(T_out, t_tile)
        W_in = 2 * lin_blk               # current block + one halo block
    else:
        multi = False
        t_tile = T_out
        V = 1
        num_tiles = 1
        lin_blk = None
        W_in = None

    t_ext = t_tile + K - 1

    # ---- static 0/1 dilation matrices D[v] : (W_in, t_ext) --------------------------------
    # column q of variant v <-> dilated position n = t*t_tile + padding - (K-1) + q ;
    # row j <-> input element i = block_start + j - lpad ; D[v, j, q] = 1 iff n = stride*i.
    entries = []
    for v in range(V):
        base = LANE * v * d + padding - (K - 1)
        for q in range(t_ext):
            num = base + q
            if num % stride == 0:
                entries.append((v, num // stride, q))
    min_j = min(j for _, j, _ in entries)
    max_j = max(j for _, j, _ in entries)
    lpad = max(0, -min_j)

    if multi:
        assert lpad + max_j < W_in, "kernel/padding extent too large for the one-block halo"
        max_blk = (num_tiles - 1) // V
        L_pad = (max_blk + 2) * lin_blk      # halo block always exists
    else:
        W_in = max(lpad + T, lpad + max_j + 1)
        L_pad = W_in
        lin_blk = W_in

    D = np.zeros((V, W_in, t_ext), np.float32)
    for v, j, q in entries:
        jj = j + lpad
        if 0 <= jj < W_in:
            D[v, jj, q] = 1.0
    D = jnp.asarray(D)

    # ---- pad x: channels -> C_pad, time -> [lpad zeros | x | zeros] of length L_pad -------
    rpad = L_pad - lpad - T
    xp = jnp.pad(x, ((0, 0), (0, C_pad - C_in), (lpad, max(rpad, 0))))
    if rpad < 0:
        xp = xp[:, :, :L_pad]            # cropped tail only feeds outputs beyond T_out

    # ---- fold the K taps into one channel-mixing matrix -----------------------------------
    wp = jnp.pad(weight, ((0, C_pad - C_in), (0, 0), (0, 0))).astype(jnp.float32)
    w_c = jnp.transpose(wp, (1, 2, 0)).reshape(C_out, K * C_pad)   # [o, k*C_pad + c] = w[c,o,k]
    b2 = bias.reshape(C_out, 1).astype(jnp.float32)

    kernel = _make_kernel(K, C_pad, t_tile, V, multi, lin_blk)

    # grid-constant operands: whole array resident in VMEM (single copy, no double buffering)
    resident = pl.BlockSpec(memory_space=pltpu.MemorySpace.VMEM)

    if multi:
        x_specs = [
            pl.BlockSpec((1, C_pad, lin_blk), lambda t, b: (b, 0, t // V)),      # current block
            pl.BlockSpec((1, C_pad, lin_blk), lambda t, b: (b, 0, t // V + 1)),  # halo block
        ]
        x_args = (xp, xp)
        scratch = [pltpu.VMEM((C_pad, W_in), jnp.float32),           # fused lo|hi input slab
                   pltpu.VMEM((K * C_pad, t_tile), jnp.float32)]     # folded contraction slab
    else:
        x_specs = [pl.BlockSpec((1, C_pad, W_in), lambda t, b: (b, 0, 0))]
        x_args = (xp,)
        scratch = [pltpu.VMEM((K * C_pad, t_tile), jnp.float32)]

    return pl.pallas_call(
        kernel,
        out_shape=jax.ShapeDtypeStruct((B, C_out, T_out), x.dtype),
        grid_spec=pltpu.PrefetchScalarGridSpec(
            num_scalar_prefetch=0,
            grid=(num_tiles, B),                       # tiles first: carries the v7x core split
            in_specs=x_specs + [resident, resident, resident],
            out_specs=pl.BlockSpec((1, C_out, t_tile), lambda t, b: (b, 0, t)),
            scratch_shapes=scratch),
        compiler_params=pltpu.CompilerParams(
            dimension_semantics=("parallel", "parallel"),
            vmem_limit_bytes=32 * 1024 * 1024),
    )(*x_args, D, w_c, b2)


def _ref_conv_transpose1d(x, weight, bias, stride, padding, output_padding):
    # straightforward scatter reference (PyTorch ConvTranspose1d semantics)
    xn, wn, bn = np.asarray(x), np.asarray(weight), np.asarray(bias)
    B, C_in, T = xn.shape
    _, C_out, K = wn.shape
    T_out = (T - 1) * stride - 2 * padding + K + output_padding
    y = np.zeros((B, C_out, T_out), np.float32)
    for b in range(B):
        for i in range(T):
            for k in range(K):
                t = i * stride + k - padding
                if 0 <= t < T_out:
                    y[b, :, t] += xn[b, :, i] @ wn[:, :, k]
    return y + bn[None, :, None]


if __name__ == "__main__":
    def run_case(B, C_in, C_out, T, K, stride, seed):
        padding = (stride + 1) // 2
        output_padding = 1 if stride % 2 else 0
        key = jax.random.fold_in(jax.random.PRNGKey(0), seed)
        kx, kw, kb = jax.random.split(key, 3)
        x = jax.random.normal(kx, (B, C_in, T), dtype=jnp.float32)
        fan = C_in * K
        bound = 1.0 / math.sqrt(fan)
        weight = jax.random.uniform(kw, (C_in, C_out, K), minval=-bound, maxval=bound,
                                    dtype=jnp.float32)
        bias = jax.random.uniform(kb, (C_out,), minval=-bound, maxval=bound, dtype=jnp.float32)

        y = jax.block_until_ready(non_causal_conv_transpose1d(x, weight, bias, stride=stride))
        y_ref = _ref_conv_transpose1d(x, weight, bias, stride, padding, output_padding)
        assert y.shape == y_ref.shape, (y.shape, y_ref.shape)
        np.testing.assert_allclose(np.asarray(y), y_ref, rtol=1e-4, atol=1e-5)

    # small config: exercises the single-tile / no-halo fallback path
    run_case(B=2, C_in=4, C_out=6, T=16, K=4, stride=2, seed=0)
    # longer sequence, odd stride: tiled path (halo blocks, partial last output block, C_in 5->8)
    run_case(B=2, C_in=5, C_out=7, T=150, K=6, stride=3, seed=1)
    # large stride: capped t_tile (512) with V=2 dilation-matrix variants
    run_case(B=2, C_in=3, C_out=5, T=80, K=16, stride=8, seed=2)
    print("KERNEL_OK")
</pallas_src>

<mosaic_0001>
module attributes {stable_mosaic.version = 11 : i64} {
  func.func @kernel(%arg0: i32, %arg1: i32, %arg2: memref<1x8x18xf32, #tpu.memory_space<vmem>>, %arg3: memref<1x18x35xf32, #tpu.memory_space<vmem>>, %arg4: memref<6x32xf32, #tpu.memory_space<vmem>>, %arg5: memref<6x1xf32, #tpu.memory_space<vmem>>, %arg6: memref<1x6x32xf32, #tpu.memory_space<vmem>>, %arg7: memref<32x32xf32, #tpu.memory_space<vmem>>) attributes {dimension_semantics = [#tpu.dimension_semantics<parallel>, #tpu.dimension_semantics<parallel>], iteration_bounds = array<i64: 1, 2>, scalar_prefetch = 0 : i64, scratch_operands = 1 : i64, tpu.core_type = #tpu.core_type<tc>, window_params = [{transform_indices = @transform_0, window_bounds = array<i64: 1, 8, 18>}, {pipeline_mode = #tpu.pipeline_mode<synchronous>, transform_indices = @transform_1, window_bounds = array<i64: 1, 18, 35>}, {pipeline_mode = #tpu.pipeline_mode<synchronous>, transform_indices = @transform_2, window_bounds = array<i64: 6, 32>}, {pipeline_mode = #tpu.pipeline_mode<synchronous>, transform_indices = @transform_3, window_bounds = array<i64: 6, 1>}, {transform_indices = @transform_4, window_bounds = array<i64: 1, 6, 32>}]} {
    %c0 = arith.constant 0 : index
    %c0_0 = arith.constant 0 : index
    %c0_1 = arith.constant 0 : index
    %0 = vector.load %arg2[%c0, %c0_0, %c0_1] : memref<1x8x18xf32, #tpu.memory_space<vmem>>, vector<1x8x18xf32>
    %1 = vector.shape_cast %0 : vector<1x8x18xf32> to vector<8x18xf32>
    %c0_2 = arith.constant 0 : index
    %c0_3 = arith.constant 0 : index
    %c0_4 = arith.constant 0 : index
    %2 = vector.load %arg3[%c0_2, %c0_3, %c0_4] : memref<1x18x35xf32, #tpu.memory_space<vmem>>, vector<1x18x35xf32>
    %3 = vector.shape_cast %2 : vector<1x18x35xf32> to vector<18x35xf32>
    %cst = arith.constant dense<0.000000e+00> : vector<8x35xf32>
    %4 = tpu.matmul %1, %3, %cst {dimension_numbers = #tpu.dot_dimension_numbers<[1], [0], [0], [1], [0, 0, 1, 1], [], []>} : vector<8x18xf32>, vector<18x35xf32>, vector<8x35xf32> -> vector<8x35xf32>
    %5 = vector.extract_strided_slice %4 {offsets = [0, 3], sizes = [8, 32], strides = [1, 1]} : vector<8x35xf32> to vector<8x32xf32>
    %c0_5 = arith.constant 0 : index
    %c0_6 = arith.constant 0 : index
    %6 = vector.load %arg7[%c0_5, %c0_6] : memref<32x32xf32, #tpu.memory_space<vmem>>, vector<8x32xf32>
    tpu.vector_store %arg7[%c0_5, %c0_6], %5 {strides = array<i32>} : memref<32x32xf32, #tpu.memory_space<vmem>>, vector<8x32xf32>,
    %7 = vector.extract_strided_slice %4 {offsets = [0, 2], sizes = [8, 32], strides = [1, 1]} : vector<8x35xf32> to vector<8x32xf32>
    %c8 = arith.constant 8 : index
    %c0_7 = arith.constant 0 : index
    %8 = vector.load %arg7[%c8, %c0_7] : memref<32x32xf32, #tpu.memory_space<vmem>>, vector<8x32xf32>
    tpu.vector_store %arg7[%c8, %c0_7], %7 {strides = array<i32>} : memref<32x32xf32, #tpu.memory_space<vmem>>, vector<8x32xf32>,
    %9 = vector.extract_strided_slice %4 {offsets = [0, 1], sizes = [8, 32], strides = [1, 1]} : vector<8x35xf32> to vector<8x32xf32>
    %c16 = arith.constant 16 : index
    %c0_8 = arith.constant 0 : index
    %10 = vector.load %arg7[%c16, %c0_8] : memref<32x32xf32, #tpu.memory_space<vmem>>, vector<8x32xf32>
    tpu.vector_store %arg7[%c16, %c0_8], %9 {strides = array<i32>} : memref<32x32xf32, #tpu.memory_space<vmem>>, vector<8x32xf32>,
    %11 = vector.extract_strided_slice %4 {offsets = [0, 0], sizes = [8, 32], strides = [1, 1]} : vector<8x35xf32> to vector<8x32xf32>
    %c24 = arith.constant 24 : index
    %c0_9 = arith.constant 0 : index
    %12 = vector.load %arg7[%c24, %c0_9] : memref<32x32xf32, #tpu.memory_space<vmem>>, vector<8x32xf32>
    tpu.vector_store %arg7[%c24, %c0_9], %11 {strides = array<i32>} : memref<32x32xf32, #tpu.memory_space<vmem>>, vector<8x32xf32>,
    %c0_10 = arith.constant 0 : index
    %c0_11 = arith.constant 0 : index
    %13 = vector.load %arg4[%c0_10, %c0_11] : memref<6x32xf32, #tpu.memory_space<vmem>>, vector<6x32xf32>
    %c0_12 = arith.constant 0 : index
    %c0_13 = arith.constant 0 : index
    %14 = vector.load %arg7[%c0_12, %c0_13] : memref<32x32xf32, #tpu.memory_space<vmem>>, vector<32x32xf32>
    %cst_14 = arith.constant dense<0.000000e+00> : vector<6x32xf32>
    %15 = tpu.matmul %13, %14, %cst_14 {dimension_numbers = #tpu.dot_dimension_numbers<[1], [0], [0], [1], [0, 0, 1, 1], [], []>} : vector<6x32xf32>, vector<32x32xf32>, vector<6x32xf32> -> vector<6x32xf32>
    %c0_15 = arith.constant 0 : index
    %c0_16 = arith.constant 0 : index
    %16 = vector.load %arg5[%c0_15, %c0_16] : memref<6x1xf32, #tpu.memory_space<vmem>>, vector<6x1xf32>
    %17 = vector.broadcast %16 : vector<6x1xf32> to vector<6x32xf32>
    %18 = arith.addf %15, %17 : vector<6x32xf32>
    %19 = vector.shape_cast %18 : vector<6x32xf32> to vector<1x6x32xf32>
    %c0_17 = arith.constant 0 : index
    %c0_18 = arith.constant 0 : index
    %c0_19 = arith.constant 0 : index
    %20 = vector.load %arg6[%c0_17, %c0_18, %c0_19] : memref<1x6x32xf32, #tpu.memory_space<vmem>>, vector<1x6x32xf32>
    tpu.vector_store %arg6[%c0_17, %c0_18, %c0_19], %19 {strides = array<i32>} : memref<1x6x32xf32, #tpu.memory_space<vmem>>, vector<1x6x32xf32>,
    return
  }
  func.func @transform_0(%arg0: i32, %arg1: i32) -> (i32, i32, i32) {
    %c0_i32 = arith.constant 0 : i32
    %c0_i32_0 = arith.constant 0 : i32
    %c0_i32_1 = arith.constant 0 : i32
    return %arg1, %c0_i32, %c0_i32_0 : i32, i32, i32
  }
  func.func @transform_1(%arg0: i32, %arg1: i32) -> (i32, i32, i32) {
    %c0_i32 = arith.constant 0 : i32
    %c0_i32_0 = arith.constant 0 : i32
    %c0_i32_1 = arith.constant 0 : i32
    %c0_i32_2 = arith.constant 0 : i32
    return %c0_i32, %c0_i32_0, %c0_i32_1 : i32, i32, i32
  }
  func.func @transform_2(%arg0: i32, %arg1: i32) -> (i32, i32) {
    %c0_i32 = arith.constant 0 : i32
    %c0_i32_0 = arith.constant 0 : i32
    %c0_i32_1 = arith.constant 0 : i32
    return %c0_i32, %c0_i32_0 : i32, i32
  }
  func.func @transform_3(%arg0: i32, %arg1: i32) -> (i32, i32) {
    %c0_i32 = arith.constant 0 : i32
    %c0_i32_0 = arith.constant 0 : i32
    %c0_i32_1 = arith.constant 0 : i32
    return %c0_i32, %c0_i32_0 : i32, i32
  }
  func.func @transform_4(%arg0: i32, %arg1: i32) -> (i32, i32, i32) {
    %c0_i32 = arith.constant 0 : i32
    %c0_i32_0 = arith.constant 0 : i32
    return %arg1, %c0_i32, %arg0 : i32, i32, i32
  }
}

</mosaic_0001>

<bundles_post_ra>
// kernel: tpu_custom_call.1
= control target key start
LH: loop header
LB: loop body
LE: loop exit
PB: predicated region body
PF: predicated region fallthrough
CT: control target
= control target key end

     0   :  { %s606_s15 = smov 0   ;;  %s608_s16 = smov 0   ;;  %s666_s0 = inlined_call_operand.vmem [shape: f32[2,8,18], index: 0, kind: input, shape index: {}]   ;;  %s667_s1 = inlined_call_operand.vmem [shape: f32[1,18,35], index: 1, kind: input, shape index: {}]   ;;  %s668_s2 = inlined_call_operand.vmem [shape: f32[6,32], index: 2, kind: input, shape index: {}]   ;;  %s669_s3 = inlined_call_operand.vmem [shape: f32[6,1], index: 3, kind: input, shape index: {}]   ;;  %s670_s4 = inlined_call_operand.vmem [shape: f32[2,6,32], index: 4, kind: output, shape index: {}]  }
   0x1   :  { %s610_s17 = smov 0  }
   0x2 LB: > { %s23_s18 = sadd.s32 1, %s568_s16  ;;  %p471_p0 = scmp.ge.s32.totalorder %s572_s17, 1  ;;  %s572_s17 = sphi %s610_s17, %s14_s17   ;;  %s568_s16 = sphi %s608_s16, %s672_s16   ;;  %s564_s15 = sphi %s606_s15, %s671_s15  }
   0x3   : > { %p24_p1 = scmp.ge.s32.totalorder %s23_s18, 2  ;;  %p175_p2 = scmp.lt.s32.totalorder %s572_s17, 3 }
   0x5   : > { %s674_s18 = smov (%p24_p1, %s23_s18), 0  ;;  %p176_p3 = pnand %p471_p0, %p175_p2 }
   0x6   : > { %v214_v0 = vld [vmem:[%s667_s1] sm:$0xff] (!%p176_p3)  ;;  %v215_v1 = vld [vmem:[%s667_s1 + $0x8] sm:$0xff] (!%p176_p3)  ;;  %v574_v2 = vmov (!%p176_p3), 0.0|0.0   ;;  %p202_p4 = scmp.lt.s32.totalorder (!%p176_p3), %s564_s15, 1  ;;  %vm575_vm0 = vmmov (!%p176_p3), 0   ;;  %v576_v4 = vmov (!%p176_p3), 0.0  }
   0x7   : > { %179 = sbr.rel (%p176_p3) target bundleno = 581 (0x245), region = 36  ;;  %508 = vmatprep.subr.bf16.mxu0 (!%p176_p3), %v574_v2  ;;  %v509_v3 = vpack.c.bf16 (!%p176_p3), %v215_v1, %v214_v0  ;;  %511 = vmatprep.subr.bf16.mxu1 (!%p176_p3), %v574_v2  ;;  %v216_v5 = vld [vmem:[%s667_s1 + $0x10] sm:$0x3] (!%p176_p3)  ;;  %vm221_vm1 = vcmask (!%p176_p3), 1041408   ;;  %vm217_vm2 = vcmask (!%p176_p3), 146432   ;;  %vm299_vm3 = vcmask (!%p176_p3), 261120  }
   0x8   : > { %494 = vmatprep.mubr.msk.f32.mxu0 (!%p176_p3), %vm575_vm0, %v576_v4  ;;  %505 = vmatprep.mubr.msk.f32.mxu1 (!%p176_p3), %vm575_vm0, %v576_v4  ;;  %s577_s29 = smov (!%p176_p3), 127   ;;  %s578_s30 = smov (!%p176_p3), 125   ;;  %v315_v9 = vld [vmem:[%s669_s3] sm:$0x3f] (!%p176_p3)  ;;  %v580_v10 = vmov (!%p176_p3), 0   ;;  %vm394_vm4 = vcmask (!%p176_p3), 259072  }
   0x9   : > { %510 = vmatpush3.bf16.msra.mxu0 (!%p176_p3), %v509_v3  ;;  %s579_s5 = smov (!%p176_p3), 126   ;;  %548 = vset.pattern.permute.xlu1 (!%p176_p3), %v580_v10  ;;  %v310_v20 = vld [vmem:[%s668_s2] sm:$0x3f] (!%p176_p3) }
   0xa   : > { %492 = vmatprep.subr.mxu0 (!%p176_p3), %v576_v4  ;;  %549 = vset.pattern.permute.xlu0 (!%p176_p3), %v580_v10 }
   0xd   : > { %493 = vmatpush3.msk.msra.mxu0 (!%p176_p3), %vm221_vm1, %v216_v5 }
   0xe   : > { %s676_s15 = smov (!%p202_p4, %s564_s15), 1 }
   0xf   : > { %s472_s25 = sshll.u32 %s676_s15, 3 }
  0x10   : > { %s205_s28 = scalar_lea.vmem %s666_s0, %s472_s25  ;;  %s212_s12 = scalar_lea.vmem %s670_s4, %s472_s25 }
  0x11   : > { %v213_v6 = vld [vmem:[%s205_s28] sm:$0xff] }
  0x12   : > { %495 = vmatmul.mubr.msk.f32.vlgmr.msra.gmra.mrb[0].mxu0 %vm217_vm2, %v213_v6 }
  0xe5   : > { %v291_v7 = vpop.f32.mrb[0].mxu0 }
  0xe6   : > { %309 = vst.msk [vmem:[#allocation2 + $0x18] sm:$0xff] %vm299_vm3, %v291_v7  ;;  %305 = vrot.lane.b32.xlu1 %v291_v7, %s577_s29  ;;  %296 = vrot.lane.b32.xlu0 %v291_v7, %s578_s30  ;;  %v496_v8 = vpop.f32.mrb[1].mxu0 }
  0xea   : > { %301 = vrot.lane.b32.xlu0 %v291_v7, %s579_s5  ;;  %318 = vperm.xlu1 %548, %v315_v9  }
  0xed   : > { %v314_v18 = vld [vmem:[#allocation2 + $0x18] sm:$0xff] }
 0x158   : > { %v306_v11 = vpop.permute.xlu1 %305  ;;  %v297_v12 = vpop.permute.xlu0 %296 }
 0x159   : > { %308 = vst.msk [vmem:[#allocation2 + $0x10] sm:$0xff] %vm299_vm3, %v306_v11  ;;  %300 = vst.msk [vmem:[#allocation2] sm:$0xff] %vm299_vm3, %v297_v12 }
 0x15c   : > { %v302_v13 = vpop.permute.xlu0 %301 }
 0x15d   : > { %304 = vst.msk [vmem:[#allocation2 + $0x8] sm:$0xff] %vm299_vm3, %v302_v13 }
 0x160   : > { %v311_v14 = vld [vmem:[#allocation2] sm:$0xff]  ;;  %v313_v17 = vld [vmem:[#allocation2 + $0x10] sm:$0xff] }
 0x161   : > { %v515_v19 = vpack.c.bf16 %v314_v18, %v313_v17 }
 0x164   : > { %v312_v15 = vld [vmem:[#allocation2 + $0x8] sm:$0xff] }
 0x165   : > { %v512_v16 = vpack.c.bf16 %v312_v15, %v311_v14 }
 0x167   : > { %513 = vmatpush3.bf16.msra.mxu1 %v512_v16 }
 0x168   : > { %514 = vmatprep.subr.bf16.mxu1 %v574_v2 }
 0x169   : > { %v319_v21 = vpop.permute.xlu1 %318 }
 0x16b   : > { %516 = vmatpush3.bf16.msra.mxu1 %v515_v19 }
 0x16e   : > { %506 = vmatmul.mubr.msk.f32.vlgmr.msra.gmra.mrb[0].mxu1 %vm299_vm3, %v310_v20 }
 0x241   : > { %v390_v22 = vpop.f32.mrb[0].mxu1 }
 0x242   : > { %v391_v23 = vadd.f32 %v390_v22, %v319_v21  ;;  %v507_v24 = vpop.f32.mrb[1].mxu1 }
 0x244   : > { %395 = vst.msk [vmem:[%s212_s12] sm:$0x3f] %vm394_vm4, %v391_v23 }
 0x245 PF: > { %s14_s17 = sadd.s32 1, %s572_s17   ;;  %s671_s15 = smov %s568_s16 }
 0x246   : > { %p11_p5 = scmp.ge.s32.totalorder %s14_s17, 4   ;;  %s672_s16 = smov %s674_s18 }
 0x248   :  { %13 = sbr.rel (!%p11_p5) target bundleno = 2 (0x2), region = 66 }

</bundles_post_ra>
